<compile_context>
chip_gen: v6e
topology: v6e:2x2x1
jax: 0.10.0
libtpu: 0.0.40
codegen_flags: <defaults>
</compile_context>

<pallas_src>
import math

import jax
import jax.numpy as jnp
from jax.experimental import pallas as pl
from jax.experimental.pallas import tpu as pltpu


# ----------------------------- helpers ------------------------------------- #

def _round_up(x, m):
    return ((x + m - 1) // m) * m


def _pick_tn(n):
    # Lane-dense tile when N is a 128-multiple; otherwise use the full extent
    # (legal: block dim == full array dim), avoiding any pad + slice passes.
    return min(512, n) if (n % 128 == 0) else n


# ------------------------------ kernels ------------------------------------ #

def _linear_kernel(x_ref, w_ref, b_ref, o_ref):
    # x_ref: (TM, K) bf16, w_ref: (K, TN) bf16, b_ref: (1, TN) f32,
    # o_ref: (TM, TN) out dtype.  Single-shot GEMM + bias (no K loop).
    acc = jnp.dot(x_ref[...], w_ref[...], preferred_element_type=jnp.float32)
    o_ref[...] = (acc + b_ref[...]).astype(o_ref.dtype)


def _conv_kernel(x_ref, w_ref, b_ref, o_ref):
    # Fused im2col 3-tap conv:
    #   x_ref: (L+2, Cin) bf16 (replicate-padded window for one batch element)
    #   w_ref: (3, Cin, TN) bf16, b_ref: (1, TN) f32, o_ref: (L, TN)
    L = o_ref.shape[0]
    xw = x_ref[...]
    acc = jnp.dot(xw[0:L, :], w_ref[0], preferred_element_type=jnp.float32)
    acc = acc + jnp.dot(xw[1:L + 1, :], w_ref[1], preferred_element_type=jnp.float32)
    acc = acc + jnp.dot(xw[2:L + 2, :], w_ref[2], preferred_element_type=jnp.float32)
    o_ref[...] = (acc + b_ref[...]).astype(o_ref.dtype)


# ----------------------------- wrappers ------------------------------------ #

def embed_linear(x, weight, bias):
    """x: (B, L, Cin), weight: (Cout, Cin), bias: (Cout,) -> (B, L, Cout)."""
    B, L, Cin = x.shape
    Cout = weight.shape[0]
    M, K, N = B * L, Cin, Cout

    x2 = x.reshape(M, K).astype(jnp.bfloat16)          # bf16 inputs, f32 accum
    w_kn = weight.T.astype(jnp.bfloat16)                # (K, N), pre-transposed
    b2 = bias.reshape(1, N).astype(jnp.float32)

    TM = min(1024, _round_up(M, 8))
    TN = _pick_tn(N)
    gm, gn = pl.cdiv(M, TM), pl.cdiv(N, TN)
    if gm * gn == 1 and M >= 16:
        # v7x: guarantee >=2 tiles on a parallel axis so both TensorCores work.
        TM = _round_up(pl.cdiv(M, 2), 8)
        gm = pl.cdiv(M, TM)

    out2 = pl.pallas_call(
        _linear_kernel,
        out_shape=jax.ShapeDtypeStruct((M, N), x.dtype),
        grid_spec=pltpu.PrefetchScalarGridSpec(
            num_scalar_prefetch=0,
            grid=(gm, gn),
            in_specs=[
                pl.BlockSpec((TM, K), lambda i, j: (i, 0)),
                pl.BlockSpec((K, TN), lambda i, j: (0, j)),
                pl.BlockSpec((1, TN), lambda i, j: (0, j)),
            ],
            out_specs=pl.BlockSpec((TM, TN), lambda i, j: (i, j)),
        ),
        compiler_params=pltpu.CompilerParams(
            dimension_semantics=("parallel", "parallel"),
            vmem_limit_bytes=32 * 1024 * 1024,
        ),
    )(x2, w_kn, b2)
    return out2.reshape(B, L, Cout)


def embed_conv1d(x, weight, bias):
    """x: (B, L, Cin), weight: (Cout, Cin, 3), bias: (Cout,) -> (B, L, Cout).

    Matches nn.Conv1d(Cin, Cout, k=3, stride=1, padding=1,
    padding_mode='replicate') applied as x.transpose(1,2) -> conv -> transpose.
    Only a small replicate-padded copy (B, L+2, Cin) is built in the wrapper;
    the 3-tap im2col happens inside the kernel (3 MXU matmuls per tile).
    """
    B, L, Cin = x.shape
    Cout = weight.shape[0]

    xp = jnp.pad(x, ((0, 0), (1, 1), (0, 0)), mode="edge").astype(jnp.bfloat16)
    # (Cout, Cin, 3) -> (3, Cin, Cout); tap k weight = w_t[k].
    w_t = jnp.transpose(weight, (2, 1, 0)).astype(jnp.bfloat16)
    b2 = bias.reshape(1, Cout).astype(jnp.float32)

    TN = _pick_tn(Cout)
    grid = (B, pl.cdiv(Cout, TN))
    # TODO(synk): tile L (overlapping windows) for very long sequences / B == 1
    # so the conv path also keeps both v7x TensorCores busy and bounds VMEM.

    out = pl.pallas_call(
        _conv_kernel,
        out_shape=jax.ShapeDtypeStruct((B, L, Cout), x.dtype),
        grid_spec=pltpu.PrefetchScalarGridSpec(
            num_scalar_prefetch=0,
            grid=grid,
            in_specs=[
                pl.BlockSpec((None, L + 2, Cin), lambda b, j: (b, 0, 0)),
                pl.BlockSpec((3, Cin, TN), lambda b, j: (0, 0, j)),
                pl.BlockSpec((1, TN), lambda b, j: (0, j)),
            ],
            out_specs=pl.BlockSpec((None, L, TN), lambda b, j: (b, 0, j)),
        ),
        compiler_params=pltpu.CompilerParams(
            dimension_semantics=("parallel", "parallel"),
            vmem_limit_bytes=32 * 1024 * 1024,
        ),
    )(xp, w_t, b2)
    return out


# --------------------------- reference (pure JAX) --------------------------- #

def _ref_linear(x, weight, bias):
    return jnp.einsum("blk,nk->bln", x, weight) + bias


def _ref_conv1d(x, weight, bias):
    B, L, Cin = x.shape
    Cout = weight.shape[0]
    xp = jnp.pad(x, ((0, 0), (1, 1), (0, 0)), mode="edge")
    out = jnp.zeros((B, L, Cout), jnp.float32)
    for k in range(3):
        out = out + jnp.einsum("bld,od->blo", xp[:, k:k + L, :], weight[:, :, k])
    return out + bias.reshape(1, 1, Cout)


# --------------------------------- main ------------------------------------ #

if __name__ == "__main__":
    key = jax.random.PRNGKey(0)
    B, L = 2, 8
    in_features, out_features = 32, 64

    k_x, k_wl, k_bl, k_wc, k_bc = jax.random.split(key, 5)

    x = jax.random.normal(k_x, (B, L, in_features), dtype=jnp.float32)

    # Deterministic parameter init (PyTorch-style uniform bounds).
    bound_l = 1.0 / math.sqrt(in_features)
    w_lin = jax.random.uniform(k_wl, (out_features, in_features),
                               minval=-bound_l, maxval=bound_l, dtype=jnp.float32)
    b_lin = jax.random.uniform(k_bl, (out_features,),
                               minval=-bound_l, maxval=bound_l, dtype=jnp.float32)

    fan_in_conv = in_features * 3
    bound_c = 1.0 / math.sqrt(fan_in_conv)
    w_conv = jax.random.uniform(k_wc, (out_features, in_features, 3),
                                minval=-bound_c, maxval=bound_c, dtype=jnp.float32)
    b_conv = jax.random.uniform(k_bc, (out_features,),
                                minval=-bound_c, maxval=bound_c, dtype=jnp.float32)

    # ---- proj='linear' path ----
    out_lin = jax.block_until_ready(embed_linear(x, w_lin, b_lin))
    ref_lin = _ref_linear(x, w_lin, b_lin)
    assert out_lin.shape == (B, L, out_features)
    # bf16 inputs / f32 accumulation -> slightly widened tolerance vs f32 ref.
    assert jnp.allclose(out_lin, ref_lin, rtol=5e-2, atol=5e-2), (
        float(jnp.max(jnp.abs(out_lin - ref_lin))))

    # ---- proj='conv' path ----
    out_conv = jax.block_until_ready(embed_conv1d(x, w_conv, b_conv))
    ref_conv = _ref_conv1d(x, w_conv, b_conv)
    assert out_conv.shape == (B, L, out_features)
    assert jnp.allclose(out_conv, ref_conv, rtol=5e-2, atol=5e-2), (
        float(jnp.max(jnp.abs(out_conv - ref_conv))))

    print("KERNEL_OK")
</pallas_src>

<mosaic_0001>
module attributes {stable_mosaic.version = 11 : i64} {
  func.func @_linear_kernel(%arg0: i32, %arg1: i32, %arg2: memref<8x32xbf16, #tpu.memory_space<vmem>>, %arg3: memref<32x64xbf16, #tpu.memory_space<vmem>>, %arg4: memref<1x64xf32, #tpu.memory_space<vmem>>, %arg5: memref<8x64xf32, #tpu.memory_space<vmem>>) attributes {dimension_semantics = [#tpu.dimension_semantics<parallel>, #tpu.dimension_semantics<parallel>], iteration_bounds = array<i64: 2, 1>, scalar_prefetch = 0 : i64, scratch_operands = 0 : i64, tpu.core_type = #tpu.core_type<tc>, window_params = [{transform_indices = @transform_0, window_bounds = array<i64: 8, 32>}, {transform_indices = @transform_1, window_bounds = array<i64: 32, 64>}, {transform_indices = @transform_2, window_bounds = array<i64: 1, 64>}, {transform_indices = @transform_3, window_bounds = array<i64: 8, 64>}]} {
    %c0 = arith.constant 0 : index
    %c0_0 = arith.constant 0 : index
    %0 = vector.load %arg2[%c0, %c0_0] : memref<8x32xbf16, #tpu.memory_space<vmem>>, vector<8x32xbf16>
    %c0_1 = arith.constant 0 : index
    %c0_2 = arith.constant 0 : index
    %1 = vector.load %arg3[%c0_1, %c0_2] : memref<32x64xbf16, #tpu.memory_space<vmem>>, vector<32x64xbf16>
    %cst = arith.constant dense<0.000000e+00> : vector<8x64xf32>
    %2 = tpu.matmul %0, %1, %cst {dimension_numbers = #tpu.dot_dimension_numbers<[1], [0], [0], [1], [0, 0, 1, 1], [], []>} : vector<8x32xbf16>, vector<32x64xbf16>, vector<8x64xf32> -> vector<8x64xf32>
    %c0_3 = arith.constant 0 : index
    %c0_4 = arith.constant 0 : index
    %3 = vector.load %arg4[%c0_3, %c0_4] : memref<1x64xf32, #tpu.memory_space<vmem>>, vector<1x64xf32>
    %4 = vector.broadcast %3 : vector<1x64xf32> to vector<8x64xf32>
    %5 = arith.addf %2, %4 : vector<8x64xf32>
    %c0_5 = arith.constant 0 : index
    %c0_6 = arith.constant 0 : index
    %6 = vector.load %arg5[%c0_5, %c0_6] : memref<8x64xf32, #tpu.memory_space<vmem>>, vector<8x64xf32>
    tpu.vector_store %arg5[%c0_5, %c0_6], %5 {strides = array<i32>} : memref<8x64xf32, #tpu.memory_space<vmem>>, vector<8x64xf32>,
    return
  }
  func.func @transform_0(%arg0: i32, %arg1: i32) -> (i32, i32) {
    %c0_i32 = arith.constant 0 : i32
    %c0_i32_0 = arith.constant 0 : i32
    return %arg0, %c0_i32 : i32, i32
  }
  func.func @transform_1(%arg0: i32, %arg1: i32) -> (i32, i32) {
    %c0_i32 = arith.constant 0 : i32
    %c0_i32_0 = arith.constant 0 : i32
    return %c0_i32, %arg1 : i32, i32
  }
  func.func @transform_2(%arg0: i32, %arg1: i32) -> (i32, i32) {
    %c0_i32 = arith.constant 0 : i32
    %c0_i32_0 = arith.constant 0 : i32
    return %c0_i32, %arg1 : i32, i32
  }
  func.func @transform_3(%arg0: i32, %arg1: i32) -> (i32, i32) {
    %c0_i32 = arith.constant 0 : i32
    return %arg0, %arg1 : i32, i32
  }
}

</mosaic_0001>

<bundles_post_ra>
// kernel: tpu_custom_call.1
= control target key start
LH: loop header
LB: loop body
LE: loop exit
PB: predicated region body
PF: predicated region fallthrough
CT: control target
= control target key end

     0   :  { %8 = vsyncpa [#allocation3], 0  ;;  %s885_s0 = inlined_call_operand.hbm [shape: bf16[16,32], index: 0, kind: input, shape index: {}]   ;;  %s886_s1 = inlined_call_operand.hbm [shape: bf16[32,64], index: 1, kind: input, shape index: {}]   ;;  %s887_s2 = inlined_call_operand.vmem [shape: f32[1,64], index: 2, kind: input, shape index: {}]   ;;  %s888_s3 = inlined_call_operand.hbm [shape: f32[16,64], index: 3, kind: output, shape index: {}]  }
   0x1   :  { %10 = vsyncpa [#allocation3 + $0x1], 0 }
   0x2   :  { %11 = vsyncpa [#allocation6], 0 }
   0x3   :  { %12 = vsyncpa [#allocation4], 0 }
   0x4   :  { %14 = vsyncpa [#allocation4 + $0x1], 0  ;;  %s702_s12 = smov 0   ;;  %s704_s13 = smov 0  }
   0x5   :  { %s706_s14 = smov 0   ;;  %s708_s15 = smov 0  }
   0x6   :  { %s710_s16 = smov 0   ;;  %s712_s17 = smov 0  }
   0x7 LB: > { %s425_s18 = sadd.s32 4294967295, %s673_s17   ;;  %s426_s19 = sadd.s32 4294967294, %s673_s17   ;;  %s673_s17 = sphi %s712_s17, %s20_s17   ;;  %s669_s16 = sphi %s710_s16, %s906_s16   ;;  %s665_s15 = sphi %s708_s15, %s905_s15   ;;  %s661_s14 = sphi %s706_s14, %s904_s14   ;;  %s657_s13 = sphi %s704_s13, %s903_s13   ;;  %s653_s12 = sphi %s702_s12, %s902_s12  }
   0x8   : > { %p52_p0 = scmp.ne.s32.totalorder %s657_s13, %s653_s12  ;;  %p736_p1 = scmp.eq.s32.totalorder %s425_s18, 0 }
   0x9   : > { %p740_p2 = scmp.eq.s32.totalorder %s425_s18, 1  ;;  %p136_p3 = scmp.eq.s32.totalorder %s426_s19, 1 }
   0xa   : > { %p746_p4 = por %p736_p1, %p52_p0  ;;  %p427_p5 = scmp.ge.s32.totalorder %s673_s17, 1 }
   0xb   : > { %p751_p6 = por %p136_p3, %p52_p0  ;;  %p143_p7 = scmp.lt.s32.totalorder %s673_s17, 3 }
   0xc   : > { %s892_s22 = scalar_select %p746_p4, 1, 0 }
   0xd   : > { %s893_s23 = scalar_select %p751_p6, 1, 0 }
   0xe   : > { %p756_p8 = pnand %p427_p5, %p143_p7  ;;  %s675_s25 = smov [#allocation5]  }
   0xf   : > { %s157_s26 = sshll.u32 %s675_s25, 4  ;;  %s32_s28 = sadd.s32 1, %s669_s16  ;;  %s158_s26 = int_to_ptr.vmem [resolvable:$true] %s157_s26 }
  0x10   : > { %p464_p9 = pneg %p756_p8  ;;  %s546_s29 = scalar_lea.vmem %s158_s26, 256 }
  0x11   : > { %p547_p13 = scmp.ne.s32.totalorder %s158_s26, %s546_s29  ;;  %p554_p5 = scmp.lt.s32.totalorder %s158_s26, %s158_s26 }
  0x12   : > { %p765_p11 = pnand %p464_p9, %p736_p1  ;;  %p555_p7 = scmp.lt.s32.totalorder %s546_s29, %s546_s29 }
  0x14   : > { %p537_p12 = pneg %p765_p11  ;;  %p556_p6 = por %p555_p7, %p554_p5 }
  0x16   : > { %p549_p0 = pnand %p547_p13, %p537_p12 }
  0x18   : > { %p550_p3 = pneg %p549_p0 }
  0x1a   : > { %p557_p4 = pnand %p556_p6, %p550_p3 }
  0x1c   : > { %560 = shalt.err (!%p557_p4)
}
  0x1d   : > { %s676_s30 = smov 64   ;;  %s677_s4 = smov 4  }
  0x1e   : > { %467 = dma.hbm_to_vmem [thread:$0]  (!%p765_p11), %s886_s1, 256, %s158_s26, [#allocation6], %s676_s30, %s676_s30, %s677_s4  }
  0x1f   : > { %p34_p6 = scmp.ge.s32.totalorder %s32_s28, 2  ;;  %s39_s7 = sadd.s32 1, %s661_s14 }
  0x20   : > { %p46_p4 = scmp.ne.s32.totalorder %s661_s14, %s657_s13  ;;  %p47_p9 = scmp.eq.s32.totalorder %s673_s17, 0 }
  0x21   : > { %s908_s28 = smov (%p34_p6, %s32_s28), 0  ;;  %p477_p0 = scmp.lt.s32.totalorder %s673_s17, 2 }
  0x22   : > { %p783_p12 = por %p47_p9, %p46_p4  ;;  %p789_p13 = por %p740_p2, %p46_p4 }
  0x23   : > { %s36_s10 = ssub.s32 %s669_s16, %s908_s28  ;;  %s177_s11 = sand.u32 1, %s661_s14  }
  0x24   : > { %p37_p11 = scmp.eq.s32.totalorder %s36_s10, 0  ;;  %s431_s18 = sshll.u32 %s177_s11, 2 }
  0x25   : > { %s432_s25 = sshll.u32 %s669_s16, 6  ;;  %s181_s30 = scalar_lea.vmem [#allocation2], %s431_s18 }
  0x26   : > { %s798_s19 = scalar_select %p37_p11, %s661_s14, %s39_s7  }
  0x27   : > { %s186_s29 = scalar_lea.hbm %s885_s0, %s432_s25  ;;  %s188_s4 = sshll.u32 %s181_s30, 4  ;;  %s189_s4 = int_to_ptr.vmem [resolvable:$true] %s188_s4 }
  0x28   : > { %p806_p2 = pnand %p477_p0, %p783_p12  ;;  %s178_s5 = scalar_lea.sflag [#allocation3], %s177_s11 }
  0x29   : > { %s574_s6 = scalar_lea.vmem %s189_s4, 64  ;;  %s678_s7 = smov [#allocation2]  }
  0x2a   : > { %p563_p3 = pneg %p806_p2  ;;  %p575_p5 = scmp.ne.s32.totalorder %s189_s4, %s574_s6 }
  0x2b   : > { %s579_s10 = sshll.u32 %s678_s7, 4  ;;  %s580_s10 = int_to_ptr.vmem [resolvable:$false] %s579_s10 }
  0x2c   : > { %p577_p7 = pnand %p575_p5, %p563_p3  ;;  %s581_s25 = scalar_lea.vmem %s580_s10, 128 }
  0x2d   : > { %p582_p4 = scmp.lt.s32.totalorder %s189_s4, %s580_s10  ;;  %p583_p9 = scmp.lt.s32.totalorder %s581_s25, %s574_s6 }
  0x2e   : > { %p578_p6 = pneg %p577_p7 }
  0x2f   : > { %p584_p11 = por %p583_p9, %p582_p4 }
  0x31   : > { %p585_p10 = pnand %p584_p11, %p578_p6 }
  0x33   : > { %588 = shalt.err (!%p585_p10)
}
  0x34   : > { %471 = dma.hbm_to_vmem [thread:$0]  (!%p806_p2), %s186_s29, 64, %s189_s4, %s178_s5  }
  0x35   : > { %197 = sbr.rel (%p756_p8) target bundleno = 279 (0x117), region = 32  ;;  %s817_s8 = sand.u32 (!%p756_p8), 1, %s657_s13  }
  0x36   : > { %s434_s11 = sshll.u32 (!%p756_p8), %s817_s8, 2  ;;  %s200_s18 = scalar_lea.sflag (!%p756_p8), [#allocation3], %s817_s8 }
  0x37   : > { %s203_s26 = scalar_lea.vmem (!%p756_p8), [#allocation2], %s434_s11  ;;  %p899_p12 = scmp.ne.s32.totalorder (!%p756_p8), %s892_s22, 0 }
  0x3a   : > { %640 = dma.done.wait (%p899_p12), %s200_s18, 64  }
  0x3b   : > { %642 = vsyncadd (%p899_p12), %s200_s18, 4294967232 }
  0x3c   : > { %644 = dma.done.wait (%p736_p1), [#allocation6], 256  }
  0x3d   : > { %646 = vsyncadd (%p736_p1), [#allocation6], 4294967040  ;;  %v679_v0 = vmov 0.0   ;;  %vm680_vm0 = vmmov 0   ;;  %v533_v1 = vld [vmem:[#allocation5 + $0x8] sm:$0xff]   ;;  %v534_v2 = vld [vmem:[#allocation5] sm:$0xff]  }
  0x3e   : > { %448 = vmatprep.subr.bf16.mxu0 %v679_v0  ;;  %452 = vmatprep.mubr.msk.bf16.mxu0 %vm680_vm0, %v679_v0  ;;  %v237_v3 = vld [vmem:[%s203_s26] sm:$0xf]  ;;  %vm261_vm1 = vcmask 261120   ;;  %s436_s22 = sshll.u32 %s817_s8, 3  ;;  %s442_s20 = sshll.u32 %s665_s15, 7  ;;  %vm305_vm2 = vcmask 523264  }
  0x3f   : > { %449 = vmatpush3.bf16.msra.mxu0 %v533_v1  ;;  %v437_v4 = vld [vmem:[%s887_s2] ss:$0 sm:$0xff]  ;;  %s232_s29 = scalar_lea.vmem [#allocation7], %s436_s22  ;;  %s837_s5 = scalar_lea.hbm %s888_s3, %s442_s20 }
  0x40   : > { %450 = vmatprep.subr.bf16.mxu0 %v679_v0  ;;  %s322_s30 = sshll.u32 %s232_s29, 4  ;;  %s308_s6 = scalar_lea.sflag [#allocation4], %s817_s8  ;;  %s839_s30 = int_to_ptr.vmem [resolvable:$true] %s322_s30 }
  0x41   : > { %s589_s15 = scalar_lea.vmem %s839_s30, 128  ;;  %s681_s7 = smov [#allocation7]  }
  0x42   : > { %p590_p1 = scmp.ne.s32.totalorder %s839_s30, %s589_s15  ;;  %s593_s10 = sshll.u32 %s681_s7, 4  ;;  %s594_s10 = int_to_ptr.vmem [resolvable:$false] %s593_s10 }
  0x43   : > { %451 = vmatpush3.bf16.msra.mxu0 %v534_v2  ;;  %s595_s25 = scalar_lea.vmem %s594_s10, 256  ;;  %p596_p0 = scmp.lt.s32.totalorder %s839_s30, %s594_s10 }
  0x44   : > { %p591_p8 = pnand %p590_p1, %p789_p13  ;;  %p597_p2 = scmp.lt.s32.totalorder %s595_s25, %s589_s15 }
  0x46   : > { %453 = vmatmul.mubr.msk.bf16.vlgmr.msra.gmra.mxu0 %vm261_vm1, %v237_v3  ;;  %p592_p10 = pneg %p591_p8  ;;  %p598_p3 = por %p597_p2, %p596_p0 }
  0x48   : > { %p599_p5 = pnand %p598_p3, %p592_p10 }
 0x106   : > { %v299_v5 = vpop.f32.mrf.mxu0 }
 0x107   : > { %v300_v6 = vadd.f32 %v437_v4, %v299_v5 }
 0x108   : > { %v454_v7 = vpop.f32.mrf.mxu0 }
 0x109   : > { %306 = vst.msk [vmem:[%s232_s29] sm:$0xff] %vm305_vm2, %v300_v6 }
 0x10a   : > { %v302_v8 = vpop.f32.mrf.mxu0 }
 0x10b   : > { %602 = shalt.err (!%p599_p5)
}
 0x10c   : > { %s603_s11 = scalar_lea.hbm %s837_s5, 128  ;;  %s607_s26 = scalar_lea.hbm %s888_s3, 256 }
 0x10d   : > { %p604_p7 = scmp.ne.s32.totalorder %s837_s5, %s603_s11  ;;  %p608_p9 = scmp.lt.s32.totalorder %s837_s5, %s888_s3 }
 0x10e   : > { %p609_p11 = scmp.lt.s32.totalorder %s607_s26, %s603_s11 }
 0x10f   : > { %p605_p6 = pnand %p604_p7, %p789_p13 }
 0x110   : > { %p610_p12 = por %p609_p11, %p608_p9 }
 0x111   : > { %p606_p4 = pneg %p605_p6 }
 0x113   : > { %p611_p1 = pnand %p610_p12, %p606_p4 }
 0x115   : > { %614 = shalt.err (!%p611_p1)
}
 0x116   : > { %462 = dma.vmem_to_hbm [thread:$0]  (%p789_p13), %s839_s30, 128, %s837_s5, %s308_s6   ;;  %v455_v9 = vpop.f32.mrf.mxu0 }
 0x117 PF: > { %s334_s27 = sand.u32 1, %s653_s12   ;;  %p900_p8 = scmp.ne.s32.totalorder %s893_s23, 0 }
 0x118   : > { %p901_p10 = scmp.ge.s32.totalorder %s673_s17, 2  ;;  %s335_s20 = scalar_lea.sflag [#allocation4], %s334_s27 }
 0x11a   : > { %p473_p0 = pnand %p901_p10, %p900_p8 }
 0x11c   : > { %p474_p2 = pneg %p473_p0 }
 0x11e   : > { %648 = dma.done.wait (%p474_p2), %s335_s20, 128  }
 0x11f   : > { %650 = vsyncadd (%p474_p2), %s335_s20, 4294967168  ;;  %s20_s17 = sadd.s32 1, %s673_s17   ;;  %s902_s12 = smov %s657_s13 }
 0x120   : > { %p17_p3 = scmp.ge.s32.totalorder %s20_s17, 4   ;;  %s903_s13 = smov %s661_s14 }
 0x121   : > { %s904_s14 = smov %s798_s19  ;;  %s905_s15 = smov %s669_s16 }
 0x122   : > { %s906_s16 = smov %s908_s28  ;;  %19 = sbr.rel (!%p17_p3) target bundleno = 7 (0x7), region = 85 }
 0x127   :  { %340 = vsyncpa [#allocation3], 1 }
 0x128   :  { %342 = vsyncpa [#allocation3 + $0x1], 1 }
 0x129   :  { %343 = vsyncpa [#allocation6], 1 }
 0x12a   :  { %344 = vsyncpa [#allocation4], 1 }
 0x12b   :  { %346 = vsyncpa [#allocation4 + $0x1], 1 }

</bundles_post_ra>
